<compile_context>
chip_gen: v7x
topology: tpu7x:2x2x1
jax: 0.10.0
libtpu: 0.0.40
codegen_flags: <defaults>
</compile_context>

<pallas_src>
import functools

import jax
import jax.numpy as jnp
from jax.experimental import pallas as pl
from jax.experimental.pallas import tpu as pltpu

_LANE = 128
_TARGET_STEP_BYTES = 2 * 1024 * 1024   # ~2 MiB of logits+targets per grid step


def _focal_loss_kernel(x_ref, t_ref, a_ref, out_ref, *, C, gamma, tr, lane,
                       inner, split, valid, needs_mask):
    j = pl.program_id(1)

    @pl.when(j == 0)
    def _init():
        out_ref[...] = jnp.zeros_like(out_ref)

    x = x_ref[0].astype(jnp.float32)            # (C, tr, lane) logits (dense vregs)
    t = t_ref[0]                                # (tr, lane) int32 class ids
    a = a_ref[...]                              # (C, 1, 1)  per-class alpha

    # one-hot over the leading class axis (pure VPU compares, dense)
    cls = jax.lax.broadcasted_iota(jnp.int32, (C, tr, lane), 0)
    mask = cls == t[None]                       # (C, tr, lane) bool

    # numerically-stable softmax pieces; class reductions are leading-axis
    # (elementwise-over-pages) reductions -> no cross-lane work, full density.
    m = jnp.max(x, axis=0)                      # (tr, lane)
    xm = x - m[None]                            # (C, tr, lane), <= 0
    e = jnp.exp(xm)                             # dense EUP, computed once
    sum_e = jnp.sum(e, axis=0)                  # (tr, lane), >= 1
    e_other = jnp.sum(jnp.where(mask, 0.0, e), axis=0)   # sum over non-target classes
    xm_t = jnp.sum(jnp.where(mask, xm, 0.0), axis=0)     # target logit - max
    alpha_t = jnp.sum(jnp.where(mask, a, 0.0), axis=0)   # gathered alpha

    log_p = xm_t - jnp.log(sum_e)               # log softmax at target, <= 0
    omp = e_other / sum_e                       # 1 - p_t, no cancellation, in [0, 1)

    # focal factor: small integer gamma (default 2) -> pure VPU multiplies
    g = float(gamma)
    if g == round(g) and 0 <= int(round(g)) <= 8:
        focal = jnp.ones_like(omp)
        for _ in range(int(round(g))):
            focal = focal * omp
    else:
        focal = jnp.power(omp, jnp.float32(g))

    loss = -alpha_t * focal * log_p             # (tr, lane), >= 0

    # mask lanes/rows past the real spatial extent (only traced when needed:
    # clipped last block and/or lane padding for ragged M)
    if needs_mask:
        if split > 1:
            row_blk = (pl.program_id(0) % split) * inner + j
        else:
            row_blk = j
        r_io = jax.lax.broadcasted_iota(jnp.int32, (tr, lane), 0)
        l_io = jax.lax.broadcasted_iota(jnp.int32, (tr, lane), 1)
        flat = (row_blk * tr + r_io) * lane + l_io
        loss = jnp.where(flat < valid, loss, 0.0)

    # fold the (tr, lane) per-step loss into the resident (8, lane) accumulator
    # (8-aligned static slices -> pure vreg adds, no relayout; tiny HBM writeback)
    if tr >= 8:                                  # tr is a multiple of 8 here
        folded = loss[0:8, :]
        for kb in range(1, tr // 8):
            folded = folded + loss[kb * 8:(kb + 1) * 8, :]
        out_ref[...] = out_ref[...] + folded
    else:                                        # tiny spatial extent (tr == R < 8)
        out_ref[0:tr, :] = out_ref[0:tr, :] + loss


def focal_loss(inputs_nchw, targets_nhw, alpha, gamma=2.0, size_average=True):
    """inputs_nchw: (B, C, H, W) float logits (f32 or bf16); targets_nhw: (B, H, W)
    int class ids; alpha: (C,) or (C, 1) per-class weights."""
    B, C, H, W = inputs_nchw.shape
    M = H * W
    N = B * M

    Mp = pl.cdiv(M, _LANE) * _LANE
    R = Mp // _LANE

    # ---- tile sizing: ~2 MiB of logits per step, capped by a VMEM working budget ----
    xb = jnp.dtype(inputs_nchw.dtype).itemsize
    row_hbm = C * _LANE * xb + _LANE * 4                     # logits + targets / row
    row_vmem = 2 * row_hbm + 8 * C * _LANE * 4               # dbl-buffered inputs + f32 temps

    try:  # generation-aware VMEM ceiling (v7x: 64 MiB physical, v5e/v6e: 128 MiB)
        phys = int(pltpu.get_tpu_info().vmem_capacity_bytes)
    except Exception:
        phys = 64 * 1024 * 1024
    vmem_limit = max(32 * 1024 * 1024, int(min(0.6 * phys, 64 * 1024 * 1024)))
    budget = min(20 * 1024 * 1024, vmem_limit // 2)

    tr = -(-_TARGET_STEP_BYTES // row_hbm)                   # ceil div
    tr = min(tr, max(8, budget // row_vmem))
    tr = max(8, (tr // 8) * 8)
    if R < 8:
        tr = R                                               # full extent (tiny M)
    elif tr > R:
        tr = (R // 8) * 8
    num_tiles = pl.cdiv(R, tr)

    # v7x: extra parallel split of the spatial axis when the batch axis alone would
    # leave a TensorCore idle/imbalanced (harmless on single-TC v5e/v6e).
    split = 1
    if (B % 2 == 1) and (num_tiles % 2 == 0) and num_tiles >= 4:
        split = 2
    inner = num_tiles // split

    # ---- free views (no transpose); pad only in the uncommon ragged-M case ----
    x3 = inputs_nchw.reshape(B, C, M)
    t2 = targets_nhw.reshape(B, M).astype(jnp.int32)
    if Mp != M:
        # TODO(synk): ragged M (not a multiple of 128) falls back to a one-time pad
        # copy; a pad-free lane-flat fallback kernel would avoid this extra HBM pass.
        x3 = jnp.pad(x3, ((0, 0), (0, 0), (0, Mp - M)))
        t2 = jnp.pad(t2, ((0, 0), (0, Mp - M)))
    x4 = x3.reshape(B, C, R, _LANE)
    t3 = t2.reshape(B, R, _LANE)
    a3 = jnp.asarray(alpha, jnp.float32).reshape(C, 1, 1)

    needs_mask = (split * inner * tr * _LANE) != M

    kernel = functools.partial(
        _focal_loss_kernel, C=C, gamma=float(gamma), tr=tr, lane=_LANE,
        inner=inner, split=split, valid=M, needs_mask=needs_mask)

    if split == 1:
        x_map = lambda b, j: (b, 0, j, 0)
        t_map = lambda b, j: (b, j, 0)
    else:
        x_map = lambda b, j: (b // split, 0, (b % split) * inner + j, 0)
        t_map = lambda b, j: (b // split, (b % split) * inner + j, 0)
    a_map = lambda b, j: (0, 0, 0)
    o_map = lambda b, j: (b, 0)

    partials = pl.pallas_call(
        kernel,
        out_shape=jax.ShapeDtypeStruct((B * split * 8, _LANE), jnp.float32),
        grid_spec=pltpu.PrefetchScalarGridSpec(
            num_scalar_prefetch=0,
            grid=(B * split, inner),
            in_specs=[
                pl.BlockSpec((1, C, tr, _LANE), x_map),
                pl.BlockSpec((1, tr, _LANE), t_map),
                pl.BlockSpec((C, 1, 1), a_map),
            ],
            out_specs=pl.BlockSpec((8, _LANE), o_map),
        ),
        compiler_params=pltpu.CompilerParams(
            dimension_semantics=("parallel", "arbitrary"),
            vmem_limit_bytes=int(vmem_limit)),
    )(x4, t3, a3)

    total = jnp.sum(partials)
    if size_average:
        return total / jnp.float32(N)
    return total


def focal_loss_reference(inputs_nchw, targets_nhw, alpha, gamma=2.0,
                         size_average=True):
    """Pure-JAX reference mirroring the PyTorch forward, for sanity checking."""
    B, C, H, W = inputs_nchw.shape
    N = B * H * W
    x = jnp.transpose(inputs_nchw, (0, 2, 3, 1)).reshape(N, C).astype(jnp.float32)
    t = targets_nhw.reshape(N).astype(jnp.int32)
    p = jax.nn.softmax(x, axis=1)
    probs = jnp.take_along_axis(p, t[:, None], axis=1)        # (N, 1)
    alpha_i = jnp.asarray(alpha, jnp.float32).reshape(C)[t][:, None]
    log_p = jnp.log(probs)
    batch_loss = -alpha_i * jnp.power(1.0 - probs, gamma) * log_p
    return jnp.mean(batch_loss) if size_average else jnp.sum(batch_loss)


if __name__ == "__main__":
    key = jax.random.PRNGKey(0)
    k1, k2 = jax.random.split(key)

    B, C, H, W = 2, 4, 16, 16
    inputs = jax.random.normal(k1, (B, C, H, W), dtype=jnp.float32)
    targets = jax.random.randint(k2, (B, H, W), 0, C, dtype=jnp.int32)

    # deterministic params: default alpha = ones(class_num, 1), gamma = 2
    alpha = jnp.ones((C, 1), dtype=jnp.float32)
    gamma = 2.0

    loss = focal_loss(inputs, targets, alpha, gamma=gamma, size_average=True)
    loss = jax.block_until_ready(loss)

    ref = focal_loss_reference(inputs, targets, alpha, gamma=gamma,
                               size_average=True)
    assert jnp.allclose(loss, ref, rtol=1e-4, atol=1e-6), (loss, ref)

    print("KERNEL_OK")
</pallas_src>

<mosaic_0001>
module attributes {stable_mosaic.version = 11 : i64} {
  func.func @_focal_loss_kernel(%arg0: i32, %arg1: i32, %arg2: memref<1x4x2x128xf32, #tpu.memory_space<vmem>>, %arg3: memref<1x2x128xi32, #tpu.memory_space<vmem>>, %arg4: memref<4x1x1xf32, #tpu.memory_space<vmem>>, %arg5: memref<8x128xf32, #tpu.memory_space<vmem>>) attributes {dimension_semantics = [#tpu.dimension_semantics<parallel>, #tpu.dimension_semantics<arbitrary>], iteration_bounds = array<i64: 2, 1>, scalar_prefetch = 0 : i64, scratch_operands = 0 : i64, tpu.core_type = #tpu.core_type<tc>, window_params = [{transform_indices = @transform_0, window_bounds = array<i64: 1, 4, 2, 128>}, {transform_indices = @transform_1, window_bounds = array<i64: 1, 2, 128>}, {pipeline_mode = #tpu.pipeline_mode<synchronous>, transform_indices = @transform_2, window_bounds = array<i64: 4, 1, 1>}, {transform_indices = @transform_3, window_bounds = array<i64: 8, 128>}]} {
    %c0_i32 = arith.constant 0 : i32
    %0 = arith.cmpi eq, %arg1, %c0_i32 : i32
    %1 = arith.extui %0 : i1 to i32
    %c0_i32_0 = arith.constant 0 : i32
    %2 = arith.cmpi ne, %1, %c0_i32_0 : i32
    scf.if %2 {
      %cst_23 = arith.constant 0.000000e+00 : f32
      %42 = vector.broadcast %cst_23 : f32 to vector<8x128xf32>
      %c0_24 = arith.constant 0 : index
      %c0_25 = arith.constant 0 : index
      %43 = vector.load %arg5[%c0_24, %c0_25] : memref<8x128xf32, #tpu.memory_space<vmem>>, vector<8x128xf32>
      tpu.vector_store %arg5[%c0_24, %c0_25], %42 {strides = array<i32>} : memref<8x128xf32, #tpu.memory_space<vmem>>, vector<8x128xf32>,
    } else {
    }
    %c0 = arith.constant 0 : index
    %c0_1 = arith.constant 0 : index
    %c0_2 = arith.constant 0 : index
    %c0_3 = arith.constant 0 : index
    %3 = vector.load %arg2[%c0, %c0_1, %c0_2, %c0_3] : memref<1x4x2x128xf32, #tpu.memory_space<vmem>>, vector<1x4x2x128xf32>
    %4 = vector.shape_cast %3 : vector<1x4x2x128xf32> to vector<4x2x128xf32>
    %c0_4 = arith.constant 0 : index
    %c0_5 = arith.constant 0 : index
    %c0_6 = arith.constant 0 : index
    %5 = vector.load %arg3[%c0_4, %c0_5, %c0_6] : memref<1x2x128xi32, #tpu.memory_space<vmem>>, vector<1x2x128xi32>
    %6 = vector.shape_cast %5 : vector<1x2x128xi32> to vector<2x128xi32>
    %c0_7 = arith.constant 0 : index
    %c0_8 = arith.constant 0 : index
    %c0_9 = arith.constant 0 : index
    %7 = vector.load %arg4[%c0_7, %c0_8, %c0_9] : memref<4x1x1xf32, #tpu.memory_space<vmem>>, vector<4x1x1xf32>
    %8 = tpu.iota {dimensions = array<i32: 0>} : vector<4x2x128xi32>
    %9 = vector.shape_cast %6 : vector<2x128xi32> to vector<1x2x128xi32>
    %10 = vector.broadcast %9 : vector<1x2x128xi32> to vector<4x2x128xi32>
    %11 = arith.cmpi eq, %8, %10 : vector<4x2x128xi32>
    %cst = arith.constant dense<0xFF800000> : vector<2x128xf32>
    %12 = vector.multi_reduction <maximumf>, %4, %cst [0] : vector<4x2x128xf32> to vector<2x128xf32>
    %13 = vector.shape_cast %12 : vector<2x128xf32> to vector<1x2x128xf32>
    %14 = vector.broadcast %13 : vector<1x2x128xf32> to vector<4x2x128xf32>
    %15 = arith.subf %4, %14 : vector<4x2x128xf32>
    %16 = math.exp %15 : vector<4x2x128xf32>
    %cst_10 = arith.constant dense<0.000000e+00> : vector<2x128xf32>
    %17 = vector.multi_reduction <add>, %16, %cst_10 [0] : vector<4x2x128xf32> to vector<2x128xf32>
    %cst_11 = arith.constant 0.000000e+00 : f32
    %18 = vector.broadcast %cst_11 : f32 to vector<4x2x128xf32>
    %19 = arith.select %11, %18, %16 : vector<4x2x128xi1>, vector<4x2x128xf32>
    %cst_12 = arith.constant dense<0.000000e+00> : vector<2x128xf32>
    %20 = vector.multi_reduction <add>, %19, %cst_12 [0] : vector<4x2x128xf32> to vector<2x128xf32>
    %cst_13 = arith.constant 0.000000e+00 : f32
    %21 = vector.broadcast %cst_13 : f32 to vector<4x2x128xf32>
    %22 = arith.select %11, %15, %21 : vector<4x2x128xi1>, vector<4x2x128xf32>
    %cst_14 = arith.constant dense<0.000000e+00> : vector<2x128xf32>
    %23 = vector.multi_reduction <add>, %22, %cst_14 [0] : vector<4x2x128xf32> to vector<2x128xf32>
    %cst_15 = arith.constant 0.000000e+00 : f32
    %24 = vector.shape_cast %7 : vector<4x1x1xf32> to vector<4x1x1xf32>
    %25 = vector.broadcast %24 : vector<4x1x1xf32> to vector<4x2x128xf32>
    %26 = vector.broadcast %cst_15 : f32 to vector<4x2x128xf32>
    %27 = arith.select %11, %25, %26 : vector<4x2x128xi1>, vector<4x2x128xf32>
    %cst_16 = arith.constant dense<0.000000e+00> : vector<2x128xf32>
    %28 = vector.multi_reduction <add>, %27, %cst_16 [0] : vector<4x2x128xf32> to vector<2x128xf32>
    %29 = math.log %17 : vector<2x128xf32>
    %30 = arith.subf %23, %29 : vector<2x128xf32>
    %31 = arith.divf %20, %17 : vector<2x128xf32>
    %cst_17 = arith.constant 1.000000e+00 : f32
    %32 = vector.broadcast %cst_17 : f32 to vector<2x128xf32>
    %33 = arith.mulf %32, %31 : vector<2x128xf32>
    %34 = arith.mulf %33, %31 : vector<2x128xf32>
    %cst_18 = arith.constant 0.000000e+00 : f32
    %35 = vector.broadcast %cst_18 : f32 to vector<2x128xf32>
    %36 = arith.subf %35, %28 : vector<2x128xf32>
    %37 = arith.mulf %36, %34 : vector<2x128xf32>
    %38 = arith.mulf %37, %30 : vector<2x128xf32>
    %c0_19 = arith.constant 0 : index
    %c0_20 = arith.constant 0 : index
    %39 = vector.load %arg5[%c0_19, %c0_20] : memref<8x128xf32, #tpu.memory_space<vmem>>, vector<2x128xf32>
    %40 = arith.addf %39, %38 : vector<2x128xf32>
    %c0_21 = arith.constant 0 : index
    %c0_22 = arith.constant 0 : index
    %41 = vector.load %arg5[%c0_21, %c0_22] : memref<8x128xf32, #tpu.memory_space<vmem>>, vector<2x128xf32>
    tpu.vector_store %arg5[%c0_21, %c0_22], %40 {strides = array<i32>} : memref<8x128xf32, #tpu.memory_space<vmem>>, vector<2x128xf32>,
    return
  }
  func.func @transform_0(%arg0: i32, %arg1: i32) -> (i32, i32, i32, i32) {
    %c0_i32 = arith.constant 0 : i32
    %c0_i32_0 = arith.constant 0 : i32
    %c0_i32_1 = arith.constant 0 : i32
    return %arg0, %c0_i32, %arg1, %c0_i32_0 : i32, i32, i32, i32
  }
  func.func @transform_1(%arg0: i32, %arg1: i32) -> (i32, i32, i32) {
    %c0_i32 = arith.constant 0 : i32
    %c0_i32_0 = arith.constant 0 : i32
    return %arg0, %arg1, %c0_i32 : i32, i32, i32
  }
  func.func @transform_2(%arg0: i32, %arg1: i32) -> (i32, i32, i32) {
    %c0_i32 = arith.constant 0 : i32
    %c0_i32_0 = arith.constant 0 : i32
    %c0_i32_1 = arith.constant 0 : i32
    %c0_i32_2 = arith.constant 0 : i32
    return %c0_i32, %c0_i32_0, %c0_i32_1 : i32, i32, i32
  }
  func.func @transform_3(%arg0: i32, %arg1: i32) -> (i32, i32) {
    %c0_i32 = arith.constant 0 : i32
    %c0_i32_0 = arith.constant 0 : i32
    return %arg0, %c0_i32 : i32, i32
  }
}

</mosaic_0001>

<bundles_post_ra>
// kernel: tpu_custom_call.1
= control target key start
LH: loop header
LB: loop body
LE: loop exit
PB: predicated region body
PF: predicated region fallthrough
CT: control target
= control target key end

     0   :  { %8 = vsyncpa [#allocation3], 0  ;;  %s935_s0 = inlined_call_operand.hbm [shape: f32[2,4,2,128], index: 0, kind: input, shape index: {}]   ;;  %s936_s1 = inlined_call_operand.vmem [shape: s32[2,2,128], index: 1, kind: input, shape index: {}]   ;;  %s937_s2 = inlined_call_operand.vmem [shape: f32[4,1,1], index: 2, kind: input, shape index: {}]   ;;  %s938_s3 = inlined_call_operand.hbm [shape: f32[16,128], index: 3, kind: output, shape index: {}]  }
   0x1   :  { %10 = vsyncpa [#allocation3 + $0x1], 0 }
   0x2   :  { %11 = vsyncpa [#allocation4], 0 }
   0x3   :  { %13 = vsyncpa [#allocation4 + $0x1], 0  ;;  %s707_s12 = smov 0   ;;  %s709_s13 = smov 0  }
   0x4   :  { %s711_s14 = smov 0   ;;  %s713_s15 = smov 0  }
   0x5   :  { %s715_s16 = smov 0   ;;  %s717_s17 = smov 0  }
   0x6 LB: > { %s467_s18 = sadd.s32 4294967295, %s679_s17   ;;  %s468_s19 = sadd.s32 4294967294, %s679_s17   ;;  %s679_s17 = sphi %s717_s17, %s19_s17   ;;  %s675_s16 = sphi %s715_s16, %s953_s16   ;;  %s671_s15 = sphi %s713_s15, %s952_s15   ;;  %s667_s14 = sphi %s711_s14, %s951_s14   ;;  %s663_s13 = sphi %s709_s13, %s950_s13   ;;  %s659_s12 = sphi %s707_s12, %s949_s12  }
   0x7   : > { %s31_s20 = sadd.s32 1, %s675_s16  ;;  %s40_s21 = sadd.s32 1, %s667_s14 }
   0x8   : > { %p33_p0 = scmp.ge.s32.totalorder %s31_s20, 2  ;;  %p47_p1 = scmp.ne.s32.totalorder %s667_s14, %s663_s13 }
   0x9   : > { %p48_p2 = scmp.eq.s32.totalorder %s679_s17, 0  ;;  %p53_p3 = scmp.ne.s32.totalorder %s663_s13, %s659_s12 }
   0xa   : > { %s955_s20 = smov (%p33_p0, %s31_s20), 0  ;;  %p54_p5 = scmp.eq.s32.totalorder %s467_s18, 0 }
   0xb   : > { %p748_p4 = por %p48_p2, %p47_p1  ;;  %s35_s23 = ssub.s32 %s675_s16, %s955_s20 }
   0xc   : > { %p126_p6 = scmp.eq.s32.totalorder %s467_s18, 1  ;;  %p38_p7 = scmp.eq.s32.totalorder %s35_s23, 0 }
   0xd   : > { %p754_p8 = por %p54_p5, %p53_p3  ;;  %p132_p10 = scmp.eq.s32.totalorder %s468_s19, 1 }
   0xe   : > { %p758_p9 = por %p126_p6, %p47_p1  ;;  %p499_p13 = scmp.lt.s32.totalorder %s679_s17, 2 }
   0xf   : > { %s763_s26 = scalar_select %p38_p7, %s667_s14, %s40_s21  }
  0x10   : > { %s942_s25 = scalar_select %p758_p9, 1, 0 }
  0x11   : > { %p765_p11 = por %p132_p10, %p53_p3  ;;  %s155_s28 = sand.u32 1, %s667_s14  }
  0x12   : > { %s471_s29 = sshll.u32 %s155_s28, 3  ;;  %s486_s30 = sshll.u32 %s675_s16, 7 }
  0x13   : > { %s943_s27 = scalar_select %p765_p11, 1, 0 }
  0x14   : > { %s776_s6 = scalar_lea.hbm %s935_s0, %s486_s30  ;;  %s159_s7 = scalar_lea.vmem [#allocation2], %s471_s29 }
  0x15   : > { %s167_s8 = sshll.u32 %s159_s7, 4  ;;  %p782_p0 = pnand %p499_p13, %p748_p4  ;;  %s778_s8 = int_to_ptr.vmem [resolvable:$true] %s167_s8 }
  0x16   : > { %s787_s10 = scalar_lea.sflag [#allocation3], %s155_s28  ;;  %s567_s11 = scalar_lea.hbm %s776_s6, 128 }
  0x17   : > { %p568_p2 = scmp.ne.s32.totalorder %s776_s6, %s567_s11  ;;  %p569_p3 = pneg %p782_p0 }
  0x18   : > { %s572_s21 = scalar_lea.hbm %s935_s0, 256  ;;  %p573_p4 = scmp.lt.u32.totalorder %s776_s6, %s935_s0 }
  0x19   : > { %p570_p5 = pnand %p569_p3, %p568_p2  ;;  %p574_p7 = scmp.lt.u32.totalorder %s572_s21, %s567_s11 }
  0x1a   : > { %p576_p13 = scmp.lt.u32.totalorder %s567_s11, %s776_s6 }
  0x1b   : > { %p571_p6 = pneg %p570_p5  ;;  %p575_p10 = por %p574_p7, %p573_p4 }
  0x1d   : > { %p577_p12 = por %p576_p13, %p575_p10 }
  0x1f   : > { %p578_p1 = pnand %p577_p12, %p571_p6 }
  0x21   : > { %581 = shalt.err (!%p578_p1)
}
  0x22   : > { %s582_s28 = scalar_lea.vmem %s778_s8, 128  ;;  %s681_s29 = smov [#allocation2]  }
  0x23   : > { %p583_p2 = scmp.ne.s32.totalorder %s778_s8, %s582_s28  ;;  %s587_s30 = sshll.u32 %s681_s29, 4  ;;  %s588_s30 = int_to_ptr.vmem [resolvable:$false] %s587_s30 }
  0x24   : > { %s589_s4 = scalar_lea.vmem %s588_s30, 256  ;;  %p590_p9 = scmp.lt.s32.totalorder %s778_s8, %s588_s30 }
  0x25   : > { %p585_p5 = pnand %p583_p2, %p569_p3  ;;  %p591_p4 = scmp.lt.s32.totalorder %s589_s4, %s582_s28 }
  0x27   : > { %p586_p11 = pneg %p585_p5  ;;  %p592_p7 = por %p591_p4, %p590_p9 }
  0x29   : > { %p593_p10 = pnand %p592_p7, %p586_p11 }
  0x2b   : > { %596 = shalt.err (!%p593_p10)
}
  0x2c   : > { %s682_s5 = smov 32   ;;  %s683_s7 = smov 2  }
  0x2d   : > { %494 = dma.hbm_to_vmem [thread:$0]  (!%p782_p0), %s776_s6, 128, %s778_s8, %s787_s10, %s682_s5, %s682_s5, %s683_s7  }
  0x2e   : > { %p185_p12 = scmp.lt.s32.totalorder %s679_s17, 3  ;;  %p945_p1 = scmp.ge.s32.totalorder %s679_s17, 1 }
  0x30   : > { %p186_p3 = pnand %p945_p1, %p185_p12 }
  0x31   : > { %s819_s11 = sand.u32 (!%p186_p3), 1, %s663_s13  }
  0x32   : > { %189 = sbr.rel (%p186_p3) target bundleno = 222 (0xde), region = 32  ;;  %s475_s18 = sshll.u32 (!%p186_p3), %s819_s11, 3 }
  0x33   : > { %s192_s19 = scalar_lea.sflag (!%p186_p3), [#allocation3], %s819_s11  ;;  %s195_s21 = scalar_lea.vmem (!%p186_p3), [#allocation2], %s475_s18 }
  0x39   : > { %650 = dma.done.wait (%p754_p8), %s192_s19, 128  }
  0x3a   : > { %652 = vsyncadd (%p754_p8), %s192_s19, 4294967168  ;;  %v684_v0 = vmov 0   ;;  %v480_v1 = vld [vmem:[%s937_s2 + $0x2] ss:$0 sm:$0xff]  ;;  %v478_v2 = vld [vmem:[%s937_s2] ss:$0 sm:$0xff] }
  0x3b   : > { %554 = vset.pattern.permute.xlu1 %v684_v0  ;;  %553 = vset.pattern.permute.xlu0 %v684_v0  ;;  %v481_v3 = vld [vmem:[%s937_s2 + $0x3] ss:$0 sm:$0xff]  ;;  %v479_v4 = vld [vmem:[%s937_s2 + $0x1] ss:$0 sm:$0xff]  ;;  %s839_s29 = scalar_lea.vmem [#allocation5], %s475_s18  ;;  %v685_v5 = vmov 0.0  }
  0x3c   : > { %328 = vperm.xlu1 %554, %v480_v1   ;;  %320 = vperm.xlu0 %553, %v478_v2   ;;  %236 = vst [vmem:[%s839_s29] sm:$0xff] %v685_v5  ;;  %vm250_vm0 = vcmask 1041408   ;;  %v237_v6 = vld [vmem:[%s195_s21] sm:$0x3]  ;;  %v238_v7 = vld [vmem:[%s195_s21 + $0x2] sm:$0x3]  ;;  %p225_p8 = scmp.lt.s32.totalorder %s671_s15, 1 }
  0x3d   : > { %v239_v8 = vld [vmem:[%s195_s21 + $0x4] sm:$0x3]  ;;  %v240_v9 = vld [vmem:[%s195_s21 + $0x6] sm:$0x3]  ;;  %v251_v10 = vsel %vm250_vm0, %v237_v6, -inf  ;;  %v252_v11 = vsel %vm250_vm0, %v238_v7, -inf }
  0x3e   : > { %v253_v12 = vsel %vm250_vm0, %v239_v8, -inf  ;;  %v254_v13 = vsel %vm250_vm0, %v240_v9, -inf  ;;  %v255_v14 = vmax.f32 %v251_v10, %v252_v11  ;;  %s226_s30 = scalar_select %p225_p8, %s671_s15, 1 }
  0x3f   : > { %v256_v15 = vmax.f32 %v253_v12, %v254_v13  ;;  %s483_s19 = sshll.u32 %s671_s15, 7  ;;  %s372_s21 = sshll.u32 %s839_s29, 4  ;;  %s887_s21 = int_to_ptr.vmem [resolvable:$true] %s372_s21 }
  0x40   : > { %332 = vperm.xlu1 %554, %v481_v3   ;;  %324 = vperm.xlu0 %553, %v479_v4   ;;  %s477_s4 = sshll.u32 %s226_s30, 1  ;;  %s885_s9 = scalar_lea.hbm %s938_s3, %s483_s19 }
  0x41   : > { %v257_v16 = vmax.f32 %v255_v14, %v256_v15  ;;  %s231_s18 = scalar_lea.vmem %s936_s1, %s477_s4  ;;  %s359_s10 = scalar_lea.sflag [#allocation4], %s819_s11 }
  0x42   : > { %v241_v33 = vld [vmem:[%s231_s18] sm:$0x3]  ;;  %s597_s22 = scalar_lea.vmem %s887_s21, 128  ;;  %p946_p11 = scmp.ne.s32.totalorder %s942_s25, 0 }
  0x43   : > { %v258_v17 = vsub.f32 %v237_v6, %v257_v16  ;;  %v259_v18 = vsub.f32 %v238_v7, %v257_v16  ;;  %v260_v20 = vsub.f32 %v239_v8, %v257_v16  ;;  %v261_v23 = vsub.f32 %v240_v9, %v257_v16  ;;  %p598_p9 = scmp.ne.s32.totalorder %s887_s21, %s597_s22  ;;  %s686_s15 = smov [#allocation5]  }
  0x44   : > { %vm247_vm1 = vcmp.eq.s32.totalorder %v241_v33, 1  ;;  %vm246_vm2 = vcmp.eq.s32.totalorder %v241_v33, 0  ;;  %vm248_vm3 = vcmp.eq.s32.totalorder %v241_v33, 2  ;;  %vm249_vm4 = vcmp.eq.s32.totalorder %v241_v33, 3  ;;  %s601_s23 = sshll.u32 %s686_s15, 4  ;;  %s602_s23 = int_to_ptr.vmem [resolvable:$false] %s601_s23 }
  0x45   : > { %v262_v19 = vmul.f32 1.442695, %v258_v17  ;;  %v264_v21 = vmul.f32 1.442695, %v259_v18  ;;  %v266_v22 = vmul.f32 1.442695, %v260_v20  ;;  %p599_p0 = pnand %p598_p9, %p946_p11  ;;  %p604_p13 = scmp.lt.s32.totalorder %s887_s21, %s602_s23 }
  0x46   : > { %v268_v24 = vmul.f32 1.442695, %v261_v23  ;;  %v288_v42 = vsel %vm246_vm2, %v258_v17, 0.0  ;;  %v289_v44 = vsel %vm247_vm1, %v259_v18, 0.0  ;;  %v290_v49 = vsel %vm248_vm3, %v260_v20, 0.0  ;;  %s603_s28 = scalar_lea.vmem %s602_s23, 256 }
  0x47   : > { %555 = vpow2.f32 %v262_v19  ;;  %v292_v47 = vsel %vm250_vm0, %v288_v42, 0.0  ;;  %v293_v48 = vsel %vm250_vm0, %v289_v44, 0.0  ;;  %v295_v55 = vsel %vm250_vm0, %v290_v49, 0.0  ;;  %v355_v18 = vld [vmem:[%s839_s29] sm:$0x3]  ;;  %p600_p6 = pneg %p599_p0  ;;  %p605_p2 = scmp.lt.s32.totalorder %s603_s28, %s597_s22 }
  0x48   : > { %557 = vpow2.f32 %v264_v21  ;;  %v294_v54 = vadd.f32 %v293_v48, %v292_v47  ;;  %v291_v57 = vsel %vm249_vm4, %v261_v23, 0.0 }
  0x49   : > { %559 = vpow2.f32 %v266_v22  ;;  %v297_v3 = vsel %vm250_vm0, %v291_v57, 0.0  ;;  %p606_p5 = por %p605_p2, %p604_p13 }
  0x4a   : > { %561 = vpow2.f32 %v268_v24  ;;  %v296_v63 = vadd.f32 %v295_v55, %v294_v54 }
  0x4b   : > { %p607_p4 = pnand %p606_p5, %p600_p6 }
  0x4c   : > { %v298_v9 = vadd.f32 %v297_v3, %v296_v63 }
  0x51   : > { %v556_v25 = vpop.eup %555 }
  0x52   : > { %v558_v26 = vpop.eup %557  ;;  %v270_v27 = vsel %vm250_vm0, %v556_v25, 0.0  ;;  %v277_v36 = vsel %vm246_vm2, 0.0, %v556_v25 }
  0x53   : > { %v271_v28 = vsel %vm250_vm0, %v558_v26, 0.0  ;;  %v560_v29 = vpop.eup %559  ;;  %v278_v37 = vsel %vm247_vm1, 0.0, %v558_v26  ;;  %v281_v39 = vsel %vm250_vm0, %v277_v36, 0.0 }
  0x54   : > { %v272_v30 = vadd.f32 %v271_v28, %v270_v27  ;;  %v273_v31 = vsel %vm250_vm0, %v560_v29, 0.0  ;;  %v562_v32 = vpop.eup %561  ;;  %v282_v40 = vsel %vm250_vm0, %v278_v37, 0.0  ;;  %v279_v41 = vsel %vm248_vm3, 0.0, %v560_v29 }
  0x55   : > { %v275_v35 = vsel %vm250_vm0, %v562_v32, 0.0  ;;  %v283_v43 = vadd.f32 %v282_v40, %v281_v39  ;;  %v284_v45 = vsel %vm250_vm0, %v279_v41, 0.0  ;;  %v280_v46 = vsel %vm249_vm4, 0.0, %v562_v32 }
  0x56   : > { %v274_v34 = vadd.f32 %v273_v31, %v272_v30  ;;  %v286_v53 = vsel %vm250_vm0, %v280_v46, 0.0 }
  0x57   : > { %v285_v50 = vadd.f32 %v284_v45, %v283_v43 }
  0x58   : > { %v276_v38 = vadd.f32 %v275_v35, %v274_v34 }
  0x59   : > { %v287_v58 = vadd.f32 %v286_v53, %v285_v50 }
  0x5a   : > { %563 = vrcp.f32 %v276_v38 }
  0x5b   : > { %565 = vlog2.f32 %v276_v38 }
  0x64   : > { %v564_v59 = vpop.eup %563 }
  0x65   : > { %v566_v1 = vpop.eup %565  ;;  %v350_v7 = vmul.f32 %v564_v59, %v287_v58 }
  0x66   : > { %v347_v11 = vmul.f32 0.6931472, %v566_v1 }
  0x67   : > { %v351_v14 = vmul.f32 %v350_v7, %v350_v7 }
  0x68   : > { %v348_v15 = vsub.f32 %v298_v9, %v347_v11 }
  0xbb   : > { %v329_v51 = vpop.permute.xlu1 %328  ;;  %v321_v52 = vpop.permute.xlu0 %320 }
  0xbc   : > { %v335_v56 = vsel %vm246_vm2, %v321_v52, 0.0  ;;  %v337_v62 = vsel %vm248_vm3, %v329_v51, 0.0 }
  0xbd   : > { %v339_v2 = vsel %vm250_vm0, %v335_v56, 0.0  ;;  %v342_v8 = vsel %vm250_vm0, %v337_v62, 0.0 }
  0xbf   : > { %v333_v60 = vpop.permute.xlu1 %332  ;;  %v325_v61 = vpop.permute.xlu0 %324 }
  0xc0   : > { %v336_v0 = vsel %vm247_vm1, %v325_v61, 0.0  ;;  %v338_v5 = vsel %vm249_vm4, %v333_v60, 0.0 }
  0xc1   : > { %v340_v4 = vsel %vm250_vm0, %v336_v0, 0.0  ;;  %v344_v12 = vsel %vm250_vm0, %v338_v5, 0.0 }
  0xc2   : > { %v341_v6 = vadd.f32 %v340_v4, %v339_v2 }
  0xc4   : > { %v343_v10 = vadd.f32 %v342_v8, %v341_v6 }
  0xc6   : > { %v345_v13 = vadd.f32 %v344_v12, %v343_v10 }
  0xc8   : > { %v352_v16 = vsub.f32 0.0, %v345_v13 }
  0xca   : > { %v353_v17 = vmul.f32 %v352_v16, %v351_v14 }
  0xcc   : > { %v354_v19 = vmul.f32 %v353_v17, %v348_v15 }
  0xce   : > { %v356_v20 = vadd.f32 %v355_v18, %v354_v19 }
  0xd0   : > { %357 = vst [vmem:[%s839_s29] sm:$0x3] %v356_v20 }
  0xd1   : > { %610 = shalt.err (!%p607_p4)
}
  0xd2   : > { %s611_s11 = scalar_lea.hbm %s885_s9, 128  ;;  %s615_s30 = scalar_lea.hbm %s938_s3, 256 }
  0xd3   : > { %p612_p7 = scmp.ne.s32.totalorder %s885_s9, %s611_s11  ;;  %p616_p1 = scmp.lt.u32.totalorder %s885_s9, %s938_s3 }
  0xd4   : > { %p617_p3 = scmp.lt.u32.totalorder %s615_s30, %s611_s11  ;;  %p619_p9 = scmp.lt.u32.totalorder %s611_s11, %s885_s9 }
  0xd5   : > { %p613_p10 = pnand %p612_p7, %p946_p11 }
  0xd6   : > { %p618_p8 = por %p617_p3, %p616_p1 }
  0xd7   : > { %p614_p12 = pneg %p613_p10 }
  0xd8   : > { %p620_p0 = por %p619_p9, %p618_p8 }
  0xda   : > { %p621_p6 = pnand %p620_p0, %p614_p12 }
  0xdc   : > { %624 = shalt.err (!%p621_p6)
}
  0xdd   : > { %489 = dma.vmem_to_hbm [thread:$0]  (%p946_p11), %s887_s21, 128, %s885_s9, %s359_s10  }
  0xde PF: > { %s384_s7 = sand.u32 1, %s659_s12   ;;  %p947_p13 = scmp.ne.s32.totalorder %s943_s27, 0 }
  0xdf   : > { %p948_p2 = scmp.ge.s32.totalorder %s679_s17, 2  ;;  %s385_s18 = scalar_lea.sflag [#allocation4], %s384_s7 }
  0xe1   : > { %p496_p5 = pnand %p948_p2, %p947_p13 }
  0xe3   : > { %654 = dma.done.wait (!%p496_p5), %s385_s18, 128  }
  0xe4   : > { %656 = vsyncadd (!%p496_p5), %s385_s18, 4294967168  ;;  %s19_s17 = sadd.s32 1, %s679_s17   ;;  %s949_s12 = smov %s663_s13 }
  0xe5   : > { %p16_p4 = scmp.ge.s32.totalorder %s19_s17, 4   ;;  %s950_s13 = smov %s667_s14 }
  0xe6   : > { %s951_s14 = smov %s763_s26  ;;  %s952_s15 = smov %s675_s16 }
  0xe7   : > { %s953_s16 = smov %s955_s20  ;;  %18 = sbr.rel (!%p16_p4) target bundleno = 6 (0x6), region = 84 }
  0xee   :  { %390 = vsyncpa [#allocation3], 1 }
  0xef   :  { %392 = vsyncpa [#allocation3 + $0x1], 1 }
  0xf0   :  { %393 = vsyncpa [#allocation4], 1 }
  0xf1   :  { %395 = vsyncpa [#allocation4 + $0x1], 1 }

</bundles_post_ra>
